<compile_context>
chip_gen: v5e
topology: v5e:2x2
jax: 0.10.0
libtpu: 0.0.40
codegen_flags: <defaults>
</compile_context>

<pallas_src>
import functools
import math

import jax
import jax.numpy as jnp
import numpy as np
from jax import lax
from jax.experimental import pallas as pl
from jax.experimental.pallas import tpu as pltpu

# Small, module-consistent sizes (input_dim must be divisible by num_heads).
B, T, D, H = 2, 8, 32, 4
DH = D // H
LN_EPS = 1e-5

# Row indices inside the packed vector operand.
ROW_LN_W, ROW_LN_B, ROW_BQ, ROW_BK, ROW_BV, ROW_BO, ROW_BFC = range(7)
N_VEC_ROWS = 8  # padded to a full sublane tile


def cross_attn_kernel(x_ref, wqkv_ref, wof_ref, vec_ref, out_ref, *, nb):
    # x_ref    : (nb*T, D)   flattened batch rows for this grid step
    # wqkv_ref : (D, 3D)     [ wq*scale | wk | wv ]   (pre-transposed, y = x @ W)
    # wof_ref  : (2, D, D)   [ wo ; wfc ]             (leading-dim packed)
    # vec_ref  : (8, D)      LayerNorm params + biases (scale folded into bq)
    # out_ref  : (nb*T, D)
    ln_w = vec_ref[ROW_LN_W]
    ln_b = vec_ref[ROW_LN_B]
    bq = vec_ref[ROW_BQ]
    bk = vec_ref[ROW_BK]
    bv = vec_ref[ROW_BV]
    bo = vec_ref[ROW_BO]
    bfc = vec_ref[ROW_BFC]

    x = x_ref[...]                                            # (nb*T, D)

    # --- LayerNorm over last dim (biased variance, like PyTorch, eps=1e-5) ---
    mean = jnp.mean(x, axis=-1, keepdims=True)
    var = jnp.mean((x - mean) ** 2, axis=-1, keepdims=True)
    xn = (x - mean) * lax.rsqrt(var + LN_EPS) * ln_w + ln_b

    # --- Fused QKV projection: one MXU push over all rows of this step ---
    qkv = jnp.dot(xn, wqkv_ref[...], preferred_element_type=jnp.float32)  # (nb*T, 3D)
    q = qkv[:, 0 * D:1 * D] + bq                               # scale already folded in
    k = qkv[:, 1 * D:2 * D] + bk
    v = qkv[:, 2 * D:3 * D] + bv

    # Single hoisted K transpose (was one per head per batch via dot_general).
    kT = k.T                                                   # (D, nb*T)

    wo = wof_ref[0]                                            # (D, D) out-projection
    wfc = wof_ref[1]                                           # (D, D) residual_fc

    # --- Per-batch, per-head attention folded into the output projection ---
    for b in range(nb):                                        # static unroll (nb <= 2)
        rows = slice(b * T, (b + 1) * T)
        qb = q[rows]                                           # (T, D)
        vb = v[rows]                                           # (T, D)
        attn = None
        for h in range(H):                                     # static unroll, H = 4
            sl = slice(h * DH, (h + 1) * DH)
            # scores = q_h @ k_h^T (scale pre-folded into q); kT slice is a
            # sublane slice at multiples of 8 -> tile-aligned, no relayout.
            s = jnp.dot(qb[:, sl], kT[sl, rows],
                        preferred_element_type=jnp.float32)    # (T, T)
            s = s - jnp.max(s, axis=-1, keepdims=True)
            p = jnp.exp(s)
            denom = jnp.sum(p, axis=-1, keepdims=True)
            r = pl.reciprocal(denom, approx=True)              # EUP slot (free next to exp)
            r = r * (2.0 - denom * r)                          # one Newton step -> f32 accurate
            oh = jnp.dot(p * r, vb[:, sl],
                         preferred_element_type=jnp.float32)   # (T, DH)
            # fold this head straight into the output projection (no lane concat)
            contrib = jnp.dot(oh, wo[sl, :],
                              preferred_element_type=jnp.float32)  # (T, D)
            attn = contrib if attn is None else attn + contrib

        # --- Residual add (dropout = identity in eval) ---
        out1 = x[rows] + attn + bo

        # --- residual_fc + second residual ---
        fc = jnp.dot(out1, wfc, preferred_element_type=jnp.float32) + bfc
        out_ref[pl.ds(b * T, T), :] = out1 + fc


def pack_params(p):
    """Pack natural per-layer params into the 3 kernel operands (scale folded)."""
    scale = 1.0 / math.sqrt(DH)
    w_qkv = jnp.concatenate(
        [p["wq"] * scale, p["wk"], p["wv"]], axis=1).astype(jnp.float32)   # (D, 3D)
    w_of = jnp.stack([p["wo"], p["wfc"]], axis=0).astype(jnp.float32)      # (2, D, D)
    vec_pack = jnp.stack(
        [p["ln_w"], p["ln_b"], p["bq"] * scale, p["bk"], p["bv"],
         p["bo"], p["bfc"], jnp.zeros((D,), jnp.float32)], axis=0
    ).astype(jnp.float32)                                                  # (8, D)
    return w_qkv, w_of, vec_pack


def _tensorcores_per_chip():
    """Best-effort trace-time query: 2 TCs on v7x, 1 on v5e/v6e."""
    try:
        kind = jax.devices()[0].device_kind.lower()
    except Exception:
        return 1
    return 2 if "v7" in kind else 1


def cross_attention_forward(x, w_qkv, w_of, vec_pack):
    """x: (B, T, D) float32. Returns (B, T, D)."""
    b, t, d = x.shape
    x2 = x.reshape(b * t, d)                     # free metadata reshape outside the kernel

    # Single-TC chips: one grid step with B folded in (no per-step overhead).
    # 2-TC chips (v7x): grid=(B,) parallel so the batch maps onto the cores.
    if _tensorcores_per_chip() >= 2 and b > 1:
        grid, nb = (b,), 1
    else:
        grid, nb = (1,), b
    rows = nb * t

    out2 = pl.pallas_call(
        functools.partial(cross_attn_kernel, nb=nb),
        out_shape=jax.ShapeDtypeStruct((b * t, d), jnp.float32),
        grid_spec=pltpu.PrefetchScalarGridSpec(
            num_scalar_prefetch=0,
            grid=grid,
            in_specs=[
                pl.BlockSpec((rows, d), lambda i: (i, 0)),          # x rows
                pl.BlockSpec((d, 3 * d), lambda i: (0, 0)),         # packed qkv weights
                pl.BlockSpec((2, d, d), lambda i: (0, 0, 0)),       # [wo ; wfc]
                pl.BlockSpec((N_VEC_ROWS, d), lambda i: (0, 0)),    # packed vectors
            ],
            out_specs=pl.BlockSpec((rows, d), lambda i: (i, 0)),
        ),
        compiler_params=pltpu.CompilerParams(dimension_semantics=("parallel",)),
    )(x2, w_qkv, w_of, vec_pack)
    return out2.reshape(b, t, d)


def reference(x, p):
    """Pure-JAX reference mirroring the PyTorch forward (eval mode)."""
    mean = jnp.mean(x, axis=-1, keepdims=True)
    var = jnp.mean((x - mean) ** 2, axis=-1, keepdims=True)
    xn = (x - mean) / jnp.sqrt(var + LN_EPS) * p["ln_w"] + p["ln_b"]

    q = xn @ p["wq"] + p["bq"]
    k = xn @ p["wk"] + p["bk"]
    v = xn @ p["wv"] + p["bv"]

    def split(a):  # (B, T, D) -> (B, H, T, DH)
        return a.reshape(a.shape[0], a.shape[1], H, DH).transpose(0, 2, 1, 3)

    qh, kh, vh = split(q), split(k), split(v)
    scores = jnp.einsum("bhtd,bhsd->bhts", qh, kh) / math.sqrt(DH)
    pa = jax.nn.softmax(scores, axis=-1)
    attn = jnp.einsum("bhts,bhsd->bhtd", pa, vh).transpose(0, 2, 1, 3).reshape(x.shape)
    attn_out = attn @ p["wo"] + p["bo"]

    out1 = x + attn_out
    return out1 + out1 @ p["wfc"] + p["bfc"]


def init_params(key):
    ks = jax.random.split(key, 9)
    s = 1.0 / math.sqrt(D)
    unif = lambda k, shape: jax.random.uniform(k, shape, jnp.float32, -s, s)
    return {
        "ln_w": jnp.ones((D,), jnp.float32),
        "ln_b": jnp.zeros((D,), jnp.float32),
        # PyTorch stores (out, in) and computes x @ W.T; we store W.T directly.
        "wq": unif(ks[0], (D, D)),
        "wk": unif(ks[1], (D, D)),
        "wv": unif(ks[2], (D, D)),
        "bq": unif(ks[3], (D,)),
        "bk": unif(ks[4], (D,)),
        "bv": unif(ks[5], (D,)),
        "wo": unif(ks[6], (D, D)),
        "bo": jnp.zeros((D,), jnp.float32),
        "wfc": unif(ks[7], (D, D)),
        "bfc": unif(ks[8], (D,)),
    }


if __name__ == "__main__":
    key = jax.random.PRNGKey(0)
    kx, kp = jax.random.split(key)
    x = jax.random.normal(kx, (B, T, D), jnp.float32)
    params = init_params(kp)
    w_qkv, w_of, vec_pack = pack_params(params)

    out = cross_attention_forward(x, w_qkv, w_of, vec_pack)
    out = jax.block_until_ready(out)

    ref = reference(x, params)
    np.testing.assert_allclose(np.asarray(out), np.asarray(ref), rtol=1e-4, atol=1e-4)
    print("KERNEL_OK")
</pallas_src>

<mosaic_0001>
module attributes {stable_mosaic.version = 11 : i64} {
  func.func @cross_attn_kernel(%arg0: i32, %arg1: memref<16x32xf32, #tpu.memory_space<vmem>>, %arg2: memref<32x96xf32, #tpu.memory_space<vmem>>, %arg3: memref<2x32x32xf32, #tpu.memory_space<vmem>>, %arg4: memref<8x32xf32, #tpu.memory_space<vmem>>, %arg5: memref<16x32xf32, #tpu.memory_space<vmem>>) attributes {dimension_semantics = [#tpu.dimension_semantics<parallel>], iteration_bounds = array<i64: 1>, scalar_prefetch = 0 : i64, scratch_operands = 0 : i64, tpu.core_type = #tpu.core_type<tc>, window_params = [{transform_indices = @transform_0, window_bounds = array<i64: 16, 32>}, {pipeline_mode = #tpu.pipeline_mode<synchronous>, transform_indices = @transform_1, window_bounds = array<i64: 32, 96>}, {pipeline_mode = #tpu.pipeline_mode<synchronous>, transform_indices = @transform_2, window_bounds = array<i64: 2, 32, 32>}, {pipeline_mode = #tpu.pipeline_mode<synchronous>, transform_indices = @transform_3, window_bounds = array<i64: 8, 32>}, {transform_indices = @transform_4, window_bounds = array<i64: 16, 32>}]} {
    %c0 = arith.constant 0 : index
    %c0_0 = arith.constant 0 : index
    %0 = vector.load %arg4[%c0, %c0_0] : memref<8x32xf32, #tpu.memory_space<vmem>>, vector<1x32xf32>
    %1 = vector.shape_cast %0 : vector<1x32xf32> to vector<32xf32>
    %c1 = arith.constant 1 : index
    %c0_1 = arith.constant 0 : index
    %2 = vector.load %arg4[%c1, %c0_1] : memref<8x32xf32, #tpu.memory_space<vmem>>, vector<1x32xf32>
    %3 = vector.shape_cast %2 : vector<1x32xf32> to vector<32xf32>
    %c2 = arith.constant 2 : index
    %c0_2 = arith.constant 0 : index
    %4 = vector.load %arg4[%c2, %c0_2] : memref<8x32xf32, #tpu.memory_space<vmem>>, vector<1x32xf32>
    %5 = vector.shape_cast %4 : vector<1x32xf32> to vector<32xf32>
    %c3 = arith.constant 3 : index
    %c0_3 = arith.constant 0 : index
    %6 = vector.load %arg4[%c3, %c0_3] : memref<8x32xf32, #tpu.memory_space<vmem>>, vector<1x32xf32>
    %7 = vector.shape_cast %6 : vector<1x32xf32> to vector<32xf32>
    %c4 = arith.constant 4 : index
    %c0_4 = arith.constant 0 : index
    %8 = vector.load %arg4[%c4, %c0_4] : memref<8x32xf32, #tpu.memory_space<vmem>>, vector<1x32xf32>
    %9 = vector.shape_cast %8 : vector<1x32xf32> to vector<32xf32>
    %c5 = arith.constant 5 : index
    %c0_5 = arith.constant 0 : index
    %10 = vector.load %arg4[%c5, %c0_5] : memref<8x32xf32, #tpu.memory_space<vmem>>, vector<1x32xf32>
    %11 = vector.shape_cast %10 : vector<1x32xf32> to vector<32xf32>
    %c6 = arith.constant 6 : index
    %c0_6 = arith.constant 0 : index
    %12 = vector.load %arg4[%c6, %c0_6] : memref<8x32xf32, #tpu.memory_space<vmem>>, vector<1x32xf32>
    %13 = vector.shape_cast %12 : vector<1x32xf32> to vector<32xf32>
    %c0_7 = arith.constant 0 : index
    %c0_8 = arith.constant 0 : index
    %14 = vector.load %arg1[%c0_7, %c0_8] : memref<16x32xf32, #tpu.memory_space<vmem>>, vector<16x32xf32>
    %cst = arith.constant dense<0.000000e+00> : vector<16xf32>
    %15 = vector.multi_reduction <add>, %14, %cst [1] : vector<16x32xf32> to vector<16xf32>
    %16 = vector.shape_cast %15 : vector<16xf32> to vector<16x1xf32>
    %cst_9 = arith.constant 3.200000e+01 : f32
    %17 = vector.broadcast %cst_9 : f32 to vector<16x1xf32>
    %18 = arith.divf %16, %17 : vector<16x1xf32>
    %19 = vector.broadcast %18 : vector<16x1xf32> to vector<16x32xf32>
    %20 = arith.subf %14, %19 : vector<16x32xf32>
    %21 = arith.mulf %20, %20 : vector<16x32xf32>
    %cst_10 = arith.constant dense<0.000000e+00> : vector<16xf32>
    %22 = vector.multi_reduction <add>, %21, %cst_10 [1] : vector<16x32xf32> to vector<16xf32>
    %23 = vector.shape_cast %22 : vector<16xf32> to vector<16x1xf32>
    %cst_11 = arith.constant 3.200000e+01 : f32
    %24 = vector.broadcast %cst_11 : f32 to vector<16x1xf32>
    %25 = arith.divf %23, %24 : vector<16x1xf32>
    %26 = vector.broadcast %18 : vector<16x1xf32> to vector<16x32xf32>
    %27 = arith.subf %14, %26 : vector<16x32xf32>
    %cst_12 = arith.constant 9.99999974E-6 : f32
    %28 = vector.broadcast %cst_12 : f32 to vector<16x1xf32>
    %29 = arith.addf %25, %28 : vector<16x1xf32>
    %30 = math.rsqrt %29 : vector<16x1xf32>
    %31 = vector.broadcast %30 : vector<16x1xf32> to vector<16x32xf32>
    %32 = arith.mulf %27, %31 : vector<16x32xf32>
    %33 = vector.shape_cast %1 : vector<32xf32> to vector<1x32xf32>
    %34 = vector.broadcast %33 : vector<1x32xf32> to vector<16x32xf32>
    %35 = arith.mulf %32, %34 : vector<16x32xf32>
    %36 = vector.shape_cast %3 : vector<32xf32> to vector<1x32xf32>
    %37 = vector.broadcast %36 : vector<1x32xf32> to vector<16x32xf32>
    %38 = arith.addf %35, %37 : vector<16x32xf32>
    %c0_13 = arith.constant 0 : index
    %c0_14 = arith.constant 0 : index
    %39 = vector.load %arg2[%c0_13, %c0_14] : memref<32x96xf32, #tpu.memory_space<vmem>>, vector<32x96xf32>
    %cst_15 = arith.constant dense<0.000000e+00> : vector<16x96xf32>
    %40 = tpu.matmul %38, %39, %cst_15 {dimension_numbers = #tpu.dot_dimension_numbers<[1], [0], [0], [1], [0, 0, 1, 1], [], []>} : vector<16x32xf32>, vector<32x96xf32>, vector<16x96xf32> -> vector<16x96xf32>
    %41 = vector.extract_strided_slice %40 {offsets = [0, 0], sizes = [16, 32], strides = [1, 1]} : vector<16x96xf32> to vector<16x32xf32>
    %42 = vector.shape_cast %5 : vector<32xf32> to vector<1x32xf32>
    %43 = vector.broadcast %42 : vector<1x32xf32> to vector<16x32xf32>
    %44 = arith.addf %41, %43 : vector<16x32xf32>
    %45 = vector.extract_strided_slice %40 {offsets = [0, 32], sizes = [16, 32], strides = [1, 1]} : vector<16x96xf32> to vector<16x32xf32>
    %46 = vector.shape_cast %7 : vector<32xf32> to vector<1x32xf32>
    %47 = vector.broadcast %46 : vector<1x32xf32> to vector<16x32xf32>
    %48 = arith.addf %45, %47 : vector<16x32xf32>
    %49 = vector.extract_strided_slice %40 {offsets = [0, 64], sizes = [16, 32], strides = [1, 1]} : vector<16x96xf32> to vector<16x32xf32>
    %50 = vector.shape_cast %9 : vector<32xf32> to vector<1x32xf32>
    %51 = vector.broadcast %50 : vector<1x32xf32> to vector<16x32xf32>
    %52 = arith.addf %49, %51 : vector<16x32xf32>
    %53 = tpu.transpose %48, [1, 0] : vector<16x32xf32> -> vector<32x16xf32>
    %c0_16 = arith.constant 0 : index
    %c0_17 = arith.constant 0 : index
    %c0_18 = arith.constant 0 : index
    %54 = vector.load %arg3[%c0_16, %c0_17, %c0_18] : memref<2x32x32xf32, #tpu.memory_space<vmem>>, vector<1x32x32xf32>
    %55 = vector.shape_cast %54 : vector<1x32x32xf32> to vector<32x32xf32>
    %c1_19 = arith.constant 1 : index
    %c0_20 = arith.constant 0 : index
    %c0_21 = arith.constant 0 : index
    %56 = vector.load %arg3[%c1_19, %c0_20, %c0_21] : memref<2x32x32xf32, #tpu.memory_space<vmem>>, vector<1x32x32xf32>
    %57 = vector.shape_cast %56 : vector<1x32x32xf32> to vector<32x32xf32>
    %58 = vector.extract_strided_slice %44 {offsets = [0, 0], sizes = [8, 32], strides = [1, 1]} : vector<16x32xf32> to vector<8x32xf32>
    %59 = vector.extract_strided_slice %52 {offsets = [0, 0], sizes = [8, 32], strides = [1, 1]} : vector<16x32xf32> to vector<8x32xf32>
    %60 = vector.extract_strided_slice %58 {offsets = [0, 0], sizes = [8, 8], strides = [1, 1]} : vector<8x32xf32> to vector<8x8xf32>
    %61 = vector.extract_strided_slice %53 {offsets = [0, 0], sizes = [8, 8], strides = [1, 1]} : vector<32x16xf32> to vector<8x8xf32>
    %cst_22 = arith.constant dense<0.000000e+00> : vector<8x8xf32>
    %62 = tpu.matmul %60, %61, %cst_22 {dimension_numbers = #tpu.dot_dimension_numbers<[1], [0], [0], [1], [0, 0, 1, 1], [], []>} : vector<8x8xf32>, vector<8x8xf32>, vector<8x8xf32> -> vector<8x8xf32>
    %cst_23 = arith.constant dense<0xFF800000> : vector<8xf32>
    %63 = vector.multi_reduction <maximumf>, %62, %cst_23 [1] : vector<8x8xf32> to vector<8xf32>
    %64 = vector.shape_cast %63 : vector<8xf32> to vector<8x1xf32>
    %65 = vector.broadcast %64 : vector<8x1xf32> to vector<8x8xf32>
    %66 = arith.subf %62, %65 : vector<8x8xf32>
    %67 = math.exp %66 : vector<8x8xf32>
    %cst_24 = arith.constant dense<0.000000e+00> : vector<8xf32>
    %68 = vector.multi_reduction <add>, %67, %cst_24 [1] : vector<8x8xf32> to vector<8xf32>
    %69 = vector.shape_cast %68 : vector<8xf32> to vector<8x1xf32>
    %70 = tpu.reciprocal %69 {approx = true} : vector<8x1xf32> -> vector<8x1xf32>
    %71 = arith.mulf %69, %70 : vector<8x1xf32>
    %cst_25 = arith.constant 2.000000e+00 : f32
    %72 = vector.broadcast %cst_25 : f32 to vector<8x1xf32>
    %73 = arith.subf %72, %71 : vector<8x1xf32>
    %74 = arith.mulf %70, %73 : vector<8x1xf32>
    %75 = vector.broadcast %74 : vector<8x1xf32> to vector<8x8xf32>
    %76 = arith.mulf %67, %75 : vector<8x8xf32>
    %77 = vector.extract_strided_slice %59 {offsets = [0, 0], sizes = [8, 8], strides = [1, 1]} : vector<8x32xf32> to vector<8x8xf32>
    %cst_26 = arith.constant dense<0.000000e+00> : vector<8x8xf32>
    %78 = tpu.matmul %76, %77, %cst_26 {dimension_numbers = #tpu.dot_dimension_numbers<[1], [0], [0], [1], [0, 0, 1, 1], [], []>} : vector<8x8xf32>, vector<8x8xf32>, vector<8x8xf32> -> vector<8x8xf32>
    %79 = vector.extract_strided_slice %55 {offsets = [0, 0], sizes = [8, 32], strides = [1, 1]} : vector<32x32xf32> to vector<8x32xf32>
    %cst_27 = arith.constant dense<0.000000e+00> : vector<8x32xf32>
    %80 = tpu.matmul %78, %79, %cst_27 {dimension_numbers = #tpu.dot_dimension_numbers<[1], [0], [0], [1], [0, 0, 1, 1], [], []>} : vector<8x8xf32>, vector<8x32xf32>, vector<8x32xf32> -> vector<8x32xf32>
    %81 = vector.extract_strided_slice %58 {offsets = [0, 8], sizes = [8, 8], strides = [1, 1]} : vector<8x32xf32> to vector<8x8xf32>
    %82 = vector.extract_strided_slice %53 {offsets = [8, 0], sizes = [8, 8], strides = [1, 1]} : vector<32x16xf32> to vector<8x8xf32>
    %cst_28 = arith.constant dense<0.000000e+00> : vector<8x8xf32>
    %83 = tpu.matmul %81, %82, %cst_28 {dimension_numbers = #tpu.dot_dimension_numbers<[1], [0], [0], [1], [0, 0, 1, 1], [], []>} : vector<8x8xf32>, vector<8x8xf32>, vector<8x8xf32> -> vector<8x8xf32>
    %cst_29 = arith.constant dense<0xFF800000> : vector<8xf32>
    %84 = vector.multi_reduction <maximumf>, %83, %cst_29 [1] : vector<8x8xf32> to vector<8xf32>
    %85 = vector.shape_cast %84 : vector<8xf32> to vector<8x1xf32>
    %86 = vector.broadcast %85 : vector<8x1xf32> to vector<8x8xf32>
    %87 = arith.subf %83, %86 : vector<8x8xf32>
    %88 = math.exp %87 : vector<8x8xf32>
    %cst_30 = arith.constant dense<0.000000e+00> : vector<8xf32>
    %89 = vector.multi_reduction <add>, %88, %cst_30 [1] : vector<8x8xf32> to vector<8xf32>
    %90 = vector.shape_cast %89 : vector<8xf32> to vector<8x1xf32>
    %91 = tpu.reciprocal %90 {approx = true} : vector<8x1xf32> -> vector<8x1xf32>
    %92 = arith.mulf %90, %91 : vector<8x1xf32>
    %cst_31 = arith.constant 2.000000e+00 : f32
    %93 = vector.broadcast %cst_31 : f32 to vector<8x1xf32>
    %94 = arith.subf %93, %92 : vector<8x1xf32>
    %95 = arith.mulf %91, %94 : vector<8x1xf32>
    %96 = vector.broadcast %95 : vector<8x1xf32> to vector<8x8xf32>
    %97 = arith.mulf %88, %96 : vector<8x8xf32>
    %98 = vector.extract_strided_slice %59 {offsets = [0, 8], sizes = [8, 8], strides = [1, 1]} : vector<8x32xf32> to vector<8x8xf32>
    %cst_32 = arith.constant dense<0.000000e+00> : vector<8x8xf32>
    %99 = tpu.matmul %97, %98, %cst_32 {dimension_numbers = #tpu.dot_dimension_numbers<[1], [0], [0], [1], [0, 0, 1, 1], [], []>} : vector<8x8xf32>, vector<8x8xf32>, vector<8x8xf32> -> vector<8x8xf32>
    %100 = vector.extract_strided_slice %55 {offsets = [8, 0], sizes = [8, 32], strides = [1, 1]} : vector<32x32xf32> to vector<8x32xf32>
    %cst_33 = arith.constant dense<0.000000e+00> : vector<8x32xf32>
    %101 = tpu.matmul %99, %100, %cst_33 {dimension_numbers = #tpu.dot_dimension_numbers<[1], [0], [0], [1], [0, 0, 1, 1], [], []>} : vector<8x8xf32>, vector<8x32xf32>, vector<8x32xf32> -> vector<8x32xf32>
    %102 = arith.addf %80, %101 : vector<8x32xf32>
    %103 = vector.extract_strided_slice %58 {offsets = [0, 16], sizes = [8, 8], strides = [1, 1]} : vector<8x32xf32> to vector<8x8xf32>
    %104 = vector.extract_strided_slice %53 {offsets = [16, 0], sizes = [8, 8], strides = [1, 1]} : vector<32x16xf32> to vector<8x8xf32>
    %cst_34 = arith.constant dense<0.000000e+00> : vector<8x8xf32>
    %105 = tpu.matmul %103, %104, %cst_34 {dimension_numbers = #tpu.dot_dimension_numbers<[1], [0], [0], [1], [0, 0, 1, 1], [], []>} : vector<8x8xf32>, vector<8x8xf32>, vector<8x8xf32> -> vector<8x8xf32>
    %cst_35 = arith.constant dense<0xFF800000> : vector<8xf32>
    %106 = vector.multi_reduction <maximumf>, %105, %cst_35 [1] : vector<8x8xf32> to vector<8xf32>
    %107 = vector.shape_cast %106 : vector<8xf32> to vector<8x1xf32>
    %108 = vector.broadcast %107 : vector<8x1xf32> to vector<8x8xf32>
    %109 = arith.subf %105, %108 : vector<8x8xf32>
    %110 = math.exp %109 : vector<8x8xf32>
    %cst_36 = arith.constant dense<0.000000e+00> : vector<8xf32>
    %111 = vector.multi_reduction <add>, %110, %cst_36 [1] : vector<8x8xf32> to vector<8xf32>
    %112 = vector.shape_cast %111 : vector<8xf32> to vector<8x1xf32>
    %113 = tpu.reciprocal %112 {approx = true} : vector<8x1xf32> -> vector<8x1xf32>
    %114 = arith.mulf %112, %113 : vector<8x1xf32>
    %cst_37 = arith.constant 2.000000e+00 : f32
    %115 = vector.broadcast %cst_37 : f32 to vector<8x1xf32>
    %116 = arith.subf %115, %114 : vector<8x1xf32>
    %117 = arith.mulf %113, %116 : vector<8x1xf32>
    %118 = vector.broadcast %117 : vector<8x1xf32> to vector<8x8xf32>
    %119 = arith.mulf %110, %118 : vector<8x8xf32>
    %120 = vector.extract_strided_slice %59 {offsets = [0, 16], sizes = [8, 8], strides = [1, 1]} : vector<8x32xf32> to vector<8x8xf32>
    %cst_38 = arith.constant dense<0.000000e+00> : vector<8x8xf32>
    %121 = tpu.matmul %119, %120, %cst_38 {dimension_numbers = #tpu.dot_dimension_numbers<[1], [0], [0], [1], [0, 0, 1, 1], [], []>} : vector<8x8xf32>, vector<8x8xf32>, vector<8x8xf32> -> vector<8x8xf32>
    %122 = vector.extract_strided_slice %55 {offsets = [16, 0], sizes = [8, 32], strides = [1, 1]} : vector<32x32xf32> to vector<8x32xf32>
    %cst_39 = arith.constant dense<0.000000e+00> : vector<8x32xf32>
    %123 = tpu.matmul %121, %122, %cst_39 {dimension_numbers = #tpu.dot_dimension_numbers<[1], [0], [0], [1], [0, 0, 1, 1], [], []>} : vector<8x8xf32>, vector<8x32xf32>, vector<8x32xf32> -> vector<8x32xf32>
    %124 = arith.addf %102, %123 : vector<8x32xf32>
    %125 = vector.extract_strided_slice %58 {offsets = [0, 24], sizes = [8, 8], strides = [1, 1]} : vector<8x32xf32> to vector<8x8xf32>
    %126 = vector.extract_strided_slice %53 {offsets = [24, 0], sizes = [8, 8], strides = [1, 1]} : vector<32x16xf32> to vector<8x8xf32>
    %cst_40 = arith.constant dense<0.000000e+00> : vector<8x8xf32>
    %127 = tpu.matmul %125, %126, %cst_40 {dimension_numbers = #tpu.dot_dimension_numbers<[1], [0], [0], [1], [0, 0, 1, 1], [], []>} : vector<8x8xf32>, vector<8x8xf32>, vector<8x8xf32> -> vector<8x8xf32>
    %cst_41 = arith.constant dense<0xFF800000> : vector<8xf32>
    %128 = vector.multi_reduction <maximumf>, %127, %cst_41 [1] : vector<8x8xf32> to vector<8xf32>
    %129 = vector.shape_cast %128 : vector<8xf32> to vector<8x1xf32>
    %130 = vector.broadcast %129 : vector<8x1xf32> to vector<8x8xf32>
    %131 = arith.subf %127, %130 : vector<8x8xf32>
    %132 = math.exp %131 : vector<8x8xf32>
    %cst_42 = arith.constant dense<0.000000e+00> : vector<8xf32>
    %133 = vector.multi_reduction <add>, %132, %cst_42 [1] : vector<8x8xf32> to vector<8xf32>
    %134 = vector.shape_cast %133 : vector<8xf32> to vector<8x1xf32>
    %135 = tpu.reciprocal %134 {approx = true} : vector<8x1xf32> -> vector<8x1xf32>
    %136 = arith.mulf %134, %135 : vector<8x1xf32>
    %cst_43 = arith.constant 2.000000e+00 : f32
    %137 = vector.broadcast %cst_43 : f32 to vector<8x1xf32>
    %138 = arith.subf %137, %136 : vector<8x1xf32>
    %139 = arith.mulf %135, %138 : vector<8x1xf32>
    %140 = vector.broadcast %139 : vector<8x1xf32> to vector<8x8xf32>
    %141 = arith.mulf %132, %140 : vector<8x8xf32>
    %142 = vector.extract_strided_slice %59 {offsets = [0, 24], sizes = [8, 8], strides = [1, 1]} : vector<8x32xf32> to vector<8x8xf32>
    %cst_44 = arith.constant dense<0.000000e+00> : vector<8x8xf32>
    %143 = tpu.matmul %141, %142, %cst_44 {dimension_numbers = #tpu.dot_dimension_numbers<[1], [0], [0], [1], [0, 0, 1, 1], [], []>} : vector<8x8xf32>, vector<8x8xf32>, vector<8x8xf32> -> vector<8x8xf32>
    %144 = vector.extract_strided_slice %55 {offsets = [24, 0], sizes = [8, 32], strides = [1, 1]} : vector<32x32xf32> to vector<8x32xf32>
    %cst_45 = arith.constant dense<0.000000e+00> : vector<8x32xf32>
    %145 = tpu.matmul %143, %144, %cst_45 {dimension_numbers = #tpu.dot_dimension_numbers<[1], [0], [0], [1], [0, 0, 1, 1], [], []>} : vector<8x8xf32>, vector<8x32xf32>, vector<8x32xf32> -> vector<8x32xf32>
    %146 = arith.addf %124, %145 : vector<8x32xf32>
    %147 = vector.extract_strided_slice %14 {offsets = [0, 0], sizes = [8, 32], strides = [1, 1]} : vector<16x32xf32> to vector<8x32xf32>
    %148 = arith.addf %147, %146 : vector<8x32xf32>
    %149 = vector.shape_cast %11 : vector<32xf32> to vector<1x32xf32>
    %150 = vector.broadcast %149 : vector<1x32xf32> to vector<8x32xf32>
    %151 = arith.addf %148, %150 : vector<8x32xf32>
    %cst_46 = arith.constant dense<0.000000e+00> : vector<8x32xf32>
    %152 = tpu.matmul %151, %57, %cst_46 {dimension_numbers = #tpu.dot_dimension_numbers<[1], [0], [0], [1], [0, 0, 1, 1], [], []>} : vector<8x32xf32>, vector<32x32xf32>, vector<8x32xf32> -> vector<8x32xf32>
    %153 = vector.shape_cast %13 : vector<32xf32> to vector<1x32xf32>
    %154 = vector.broadcast %153 : vector<1x32xf32> to vector<8x32xf32>
    %155 = arith.addf %152, %154 : vector<8x32xf32>
    %156 = arith.addf %151, %155 : vector<8x32xf32>
    %c0_47 = arith.constant 0 : index
    %c0_48 = arith.constant 0 : index
    %157 = vector.load %arg5[%c0_47, %c0_48] : memref<16x32xf32, #tpu.memory_space<vmem>>, vector<8x32xf32>
    tpu.vector_store %arg5[%c0_47, %c0_48], %156 {strides = array<i32>} : memref<16x32xf32, #tpu.memory_space<vmem>>, vector<8x32xf32>,
    %158 = vector.extract_strided_slice %44 {offsets = [8, 0], sizes = [8, 32], strides = [1, 1]} : vector<16x32xf32> to vector<8x32xf32>
    %159 = vector.extract_strided_slice %52 {offsets = [8, 0], sizes = [8, 32], strides = [1, 1]} : vector<16x32xf32> to vector<8x32xf32>
    %160 = vector.extract_strided_slice %158 {offsets = [0, 0], sizes = [8, 8], strides = [1, 1]} : vector<8x32xf32> to vector<8x8xf32>
    %161 = vector.extract_strided_slice %53 {offsets = [0, 8], sizes = [8, 8], strides = [1, 1]} : vector<32x16xf32> to vector<8x8xf32>
    %cst_49 = arith.constant dense<0.000000e+00> : vector<8x8xf32>
    %162 = tpu.matmul %160, %161, %cst_49 {dimension_numbers = #tpu.dot_dimension_numbers<[1], [0], [0], [1], [0, 0, 1, 1], [], []>} : vector<8x8xf32>, vector<8x8xf32>, vector<8x8xf32> -> vector<8x8xf32>
    %cst_50 = arith.constant dense<0xFF800000> : vector<8xf32>
    %163 = vector.multi_reduction <maximumf>, %162, %cst_50 [1] : vector<8x8xf32> to vector<8xf32>
    %164 = vector.shape_cast %163 : vector<8xf32> to vector<8x1xf32>
    %165 = vector.broadcast %164 : vector<8x1xf32> to vector<8x8xf32>
    %166 = arith.subf %162, %165 : vector<8x8xf32>
    %167 = math.exp %166 : vector<8x8xf32>
    %cst_51 = arith.constant dense<0.000000e+00> : vector<8xf32>
    %168 = vector.multi_reduction <add>, %167, %cst_51 [1] : vector<8x8xf32> to vector<8xf32>
    %169 = vector.shape_cast %168 : vector<8xf32> to vector<8x1xf32>
    %170 = tpu.reciprocal %169 {approx = true} : vector<8x1xf32> -> vector<8x1xf32>
    %171 = arith.mulf %169, %170 : vector<8x1xf32>
    %cst_52 = arith.constant 2.000000e+00 : f32
    %172 = vector.broadcast %cst_52 : f32 to vector<8x1xf32>
    %173 = arith.subf %172, %171 : vector<8x1xf32>
    %174 = arith.mulf %170, %173 : vector<8x1xf32>
    %175 = vector.broadcast %174 : vector<8x1xf32> to vector<8x8xf32>
    %176 = arith.mulf %167, %175 : vector<8x8xf32>
    %177 = vector.extract_strided_slice %159 {offsets = [0, 0], sizes = [8, 8], strides = [1, 1]} : vector<8x32xf32> to vector<8x8xf32>
    %cst_53 = arith.constant dense<0.000000e+00> : vector<8x8xf32>
    %178 = tpu.matmul %176, %177, %cst_53 {dimension_numbers = #tpu.dot_dimension_numbers<[1], [0], [0], [1], [0, 0, 1, 1], [], []>} : vector<8x8xf32>, vector<8x8xf32>, vector<8x8xf32> -> vector<8x8xf32>
    %179 = vector.extract_strided_slice %55 {offsets = [0, 0], sizes = [8, 32], strides = [1, 1]} : vector<32x32xf32> to vector<8x32xf32>
    %cst_54 = arith.constant dense<0.000000e+00> : vector<8x32xf32>
    %180 = tpu.matmul %178, %179, %cst_54 {dimension_numbers = #tpu.dot_dimension_numbers<[1], [0], [0], [1], [0, 0, 1, 1], [], []>} : vector<8x8xf32>, vector<8x32xf32>, vector<8x32xf32> -> vector<8x32xf32>
    %181 = vector.extract_strided_slice %158 {offsets = [0, 8], sizes = [8, 8], strides = [1, 1]} : vector<8x32xf32> to vector<8x8xf32>
    %182 = vector.extract_strided_slice %53 {offsets = [8, 8], sizes = [8, 8], strides = [1, 1]} : vector<32x16xf32> to vector<8x8xf32>
    %cst_55 = arith.constant dense<0.000000e+00> : vector<8x8xf32>
    %183 = tpu.matmul %181, %182, %cst_55 {dimension_numbers = #tpu.dot_dimension_numbers<[1], [0], [0], [1], [0, 0, 1, 1], [], []>} : vector<8x8xf32>, vector<8x8xf32>, vector<8x8xf32> -> vector<8x8xf32>
    %cst_56 = arith.constant dense<0xFF800000> : vector<8xf32>
    %184 = vector.multi_reduction <maximumf>, %183, %cst_56 [1] : vector<8x8xf32> to vector<8xf32>
    %185 = vector.shape_cast %184 : vector<8xf32> to vector<8x1xf32>
    %186 = vector.broadcast %185 : vector<8x1xf32> to vector<8x8xf32>
    %187 = arith.subf %183, %186 : vector<8x8xf32>
    %188 = math.exp %187 : vector<8x8xf32>
    %cst_57 = arith.constant dense<0.000000e+00> : vector<8xf32>
    %189 = vector.multi_reduction <add>, %188, %cst_57 [1] : vector<8x8xf32> to vector<8xf32>
    %190 = vector.shape_cast %189 : vector<8xf32> to vector<8x1xf32>
    %191 = tpu.reciprocal %190 {approx = true} : vector<8x1xf32> -> vector<8x1xf32>
    %192 = arith.mulf %190, %191 : vector<8x1xf32>
    %cst_58 = arith.constant 2.000000e+00 : f32
    %193 = vector.broadcast %cst_58 : f32 to vector<8x1xf32>
    %194 = arith.subf %193, %192 : vector<8x1xf32>
    %195 = arith.mulf %191, %194 : vector<8x1xf32>
    %196 = vector.broadcast %195 : vector<8x1xf32> to vector<8x8xf32>
    %197 = arith.mulf %188, %196 : vector<8x8xf32>
    %198 = vector.extract_strided_slice %159 {offsets = [0, 8], sizes = [8, 8], strides = [1, 1]} : vector<8x32xf32> to vector<8x8xf32>
    %cst_59 = arith.constant dense<0.000000e+00> : vector<8x8xf32>
    %199 = tpu.matmul %197, %198, %cst_59 {dimension_numbers = #tpu.dot_dimension_numbers<[1], [0], [0], [1], [0, 0, 1, 1], [], []>} : vector<8x8xf32>, vector<8x8xf32>, vector<8x8xf32> -> vector<8x8xf32>
    %200 = vector.extract_strided_slice %55 {offsets = [8, 0], sizes = [8, 32], strides = [1, 1]} : vector<32x32xf32> to vector<8x32xf32>
    %cst_60 = arith.constant dense<0.000000e+00> : vector<8x32xf32>
    %201 = tpu.matmul %199, %200, %cst_60 {dimension_numbers = #tpu.dot_dimension_numbers<[1], [0], [0], [1], [0, 0, 1, 1], [], []>} : vector<8x8xf32>, vector<8x32xf32>, vector<8x32xf32> -> vector<8x32xf32>
    %202 = arith.addf %180, %201 : vector<8x32xf32>
    %203 = vector.extract_strided_slice %158 {offsets = [0, 16], sizes = [8, 8], strides = [1, 1]} : vector<8x32xf32> to vector<8x8xf32>
    %204 = vector.extract_strided_slice %53 {offsets = [16, 8], sizes = [8, 8], strides = [1, 1]} : vector<32x16xf32> to vector<8x8xf32>
    %cst_61 = arith.constant dense<0.000000e+00> : vector<8x8xf32>
    %205 = tpu.matmul %203, %204, %cst_61 {dimension_numbers = #tpu.dot_dimension_numbers<[1], [0], [0], [1], [0, 0, 1, 1], [], []>} : vector<8x8xf32>, vector<8x8xf32>, vector<8x8xf32> -> vector<8x8xf32>
    %cst_62 = arith.constant dense<0xFF800000> : vector<8xf32>
    %206 = vector.multi_reduction <maximumf>, %205, %cst_62 [1] : vector<8x8xf32> to vector<8xf32>
    %207 = vector.shape_cast %206 : vector<8xf32> to vector<8x1xf32>
    %208 = vector.broadcast %207 : vector<8x1xf32> to vector<8x8xf32>
    %209 = arith.subf %205, %208 : vector<8x8xf32>
    %210 = math.exp %209 : vector<8x8xf32>
    %cst_63 = arith.constant dense<0.000000e+00> : vector<8xf32>
    %211 = vector.multi_reduction <add>, %210, %cst_63 [1] : vector<8x8xf32> to vector<8xf32>
    %212 = vector.shape_cast %211 : vector<8xf32> to vector<8x1xf32>
    %213 = tpu.reciprocal %212 {approx = true} : vector<8x1xf32> -> vector<8x1xf32>
    %214 = arith.mulf %212, %213 : vector<8x1xf32>
    %cst_64 = arith.constant 2.000000e+00 : f32
    %215 = vector.broadcast %cst_64 : f32 to vector<8x1xf32>
    %216 = arith.subf %215, %214 : vector<8x1xf32>
    %217 = arith.mulf %213, %216 : vector<8x1xf32>
    %218 = vector.broadcast %217 : vector<8x1xf32> to vector<8x8xf32>
    %219 = arith.mulf %210, %218 : vector<8x8xf32>
    %220 = vector.extract_strided_slice %159 {offsets = [0, 16], sizes = [8, 8], strides = [1, 1]} : vector<8x32xf32> to vector<8x8xf32>
    %cst_65 = arith.constant dense<0.000000e+00> : vector<8x8xf32>
    %221 = tpu.matmul %219, %220, %cst_65 {dimension_numbers = #tpu.dot_dimension_numbers<[1], [0], [0], [1], [0, 0, 1, 1], [], []>} : vector<8x8xf32>, vector<8x8xf32>, vector<8x8xf32> -> vector<8x8xf32>
    %222 = vector.extract_strided_slice %55 {offsets = [16, 0], sizes = [8, 32], strides = [1, 1]} : vector<32x32xf32> to vector<8x32xf32>
    %cst_66 = arith.constant dense<0.000000e+00> : vector<8x32xf32>
    %223 = tpu.matmul %221, %222, %cst_66 {dimension_numbers = #tpu.dot_dimension_numbers<[1], [0], [0], [1], [0, 0, 1, 1], [], []>} : vector<8x8xf32>, vector<8x32xf32>, vector<8x32xf32> -> vector<8x32xf32>
    %224 = arith.addf %202, %223 : vector<8x32xf32>
    %225 = vector.extract_strided_slice %158 {offsets = [0, 24], sizes = [8, 8], strides = [1, 1]} : vector<8x32xf32> to vector<8x8xf32>
    %226 = vector.extract_strided_slice %53 {offsets = [24, 8], sizes = [8, 8], strides = [1, 1]} : vector<32x16xf32> to vector<8x8xf32>
    %cst_67 = arith.constant dense<0.000000e+00> : vector<8x8xf32>
    %227 = tpu.matmul %225, %226, %cst_67 {dimension_numbers = #tpu.dot_dimension_numbers<[1], [0], [0], [1], [0, 0, 1, 1], [], []>} : vector<8x8xf32>, vector<8x8xf32>, vector<8x8xf32> -> vector<8x8xf32>
    %cst_68 = arith.constant dense<0xFF800000> : vector<8xf32>
    %228 = vector.multi_reduction <maximumf>, %227, %cst_68 [1] : vector<8x8xf32> to vector<8xf32>
    %229 = vector.shape_cast %228 : vector<8xf32> to vector<8x1xf32>
    %230 = vector.broadcast %229 : vector<8x1xf32> to vector<8x8xf32>
    %231 = arith.subf %227, %230 : vector<8x8xf32>
    %232 = math.exp %231 : vector<8x8xf32>
    %cst_69 = arith.constant dense<0.000000e+00> : vector<8xf32>
    %233 = vector.multi_reduction <add>, %232, %cst_69 [1] : vector<8x8xf32> to vector<8xf32>
    %234 = vector.shape_cast %233 : vector<8xf32> to vector<8x1xf32>
    %235 = tpu.reciprocal %234 {approx = true} : vector<8x1xf32> -> vector<8x1xf32>
    %236 = arith.mulf %234, %235 : vector<8x1xf32>
    %cst_70 = arith.constant 2.000000e+00 : f32
    %237 = vector.broadcast %cst_70 : f32 to vector<8x1xf32>
    %238 = arith.subf %237, %236 : vector<8x1xf32>
    %239 = arith.mulf %235, %238 : vector<8x1xf32>
    %240 = vector.broadcast %239 : vector<8x1xf32> to vector<8x8xf32>
    %241 = arith.mulf %232, %240 : vector<8x8xf32>
    %242 = vector.extract_strided_slice %159 {offsets = [0, 24], sizes = [8, 8], strides = [1, 1]} : vector<8x32xf32> to vector<8x8xf32>
    %cst_71 = arith.constant dense<0.000000e+00> : vector<8x8xf32>
    %243 = tpu.matmul %241, %242, %cst_71 {dimension_numbers = #tpu.dot_dimension_numbers<[1], [0], [0], [1], [0, 0, 1, 1], [], []>} : vector<8x8xf32>, vector<8x8xf32>, vector<8x8xf32> -> vector<8x8xf32>
    %244 = vector.extract_strided_slice %55 {offsets = [24, 0], sizes = [8, 32], strides = [1, 1]} : vector<32x32xf32> to vector<8x32xf32>
    %cst_72 = arith.constant dense<0.000000e+00> : vector<8x32xf32>
    %245 = tpu.matmul %243, %244, %cst_72 {dimension_numbers = #tpu.dot_dimension_numbers<[1], [0], [0], [1], [0, 0, 1, 1], [], []>} : vector<8x8xf32>, vector<8x32xf32>, vector<8x32xf32> -> vector<8x32xf32>
    %246 = arith.addf %224, %245 : vector<8x32xf32>
    %247 = vector.extract_strided_slice %14 {offsets = [8, 0], sizes = [8, 32], strides = [1, 1]} : vector<16x32xf32> to vector<8x32xf32>
    %248 = arith.addf %247, %246 : vector<8x32xf32>
    %249 = vector.shape_cast %11 : vector<32xf32> to vector<1x32xf32>
    %250 = vector.broadcast %249 : vector<1x32xf32> to vector<8x32xf32>
    %251 = arith.addf %248, %250 : vector<8x32xf32>
    %cst_73 = arith.constant dense<0.000000e+00> : vector<8x32xf32>
    %252 = tpu.matmul %251, %57, %cst_73 {dimension_numbers = #tpu.dot_dimension_numbers<[1], [0], [0], [1], [0, 0, 1, 1], [], []>} : vector<8x32xf32>, vector<32x32xf32>, vector<8x32xf32> -> vector<8x32xf32>
    %253 = vector.shape_cast %13 : vector<32xf32> to vector<1x32xf32>
    %254 = vector.broadcast %253 : vector<1x32xf32> to vector<8x32xf32>
    %255 = arith.addf %252, %254 : vector<8x32xf32>
    %256 = arith.addf %251, %255 : vector<8x32xf32>
    %c8 = arith.constant 8 : index
    %c0_74 = arith.constant 0 : index
    %257 = vector.load %arg5[%c8, %c0_74] : memref<16x32xf32, #tpu.memory_space<vmem>>, vector<8x32xf32>
    tpu.vector_store %arg5[%c8, %c0_74], %256 {strides = array<i32>} : memref<16x32xf32, #tpu.memory_space<vmem>>, vector<8x32xf32>,
    return
  }
  func.func @transform_0(%arg0: i32) -> (i32, i32) {
    %c0_i32 = arith.constant 0 : i32
    %c0_i32_0 = arith.constant 0 : i32
    return %arg0, %c0_i32 : i32, i32
  }
  func.func @transform_1(%arg0: i32) -> (i32, i32) {
    %c0_i32 = arith.constant 0 : i32
    %c0_i32_0 = arith.constant 0 : i32
    %c0_i32_1 = arith.constant 0 : i32
    return %c0_i32, %c0_i32_0 : i32, i32
  }
  func.func @transform_2(%arg0: i32) -> (i32, i32, i32) {
    %c0_i32 = arith.constant 0 : i32
    %c0_i32_0 = arith.constant 0 : i32
    %c0_i32_1 = arith.constant 0 : i32
    %c0_i32_2 = arith.constant 0 : i32
    return %c0_i32, %c0_i32_0, %c0_i32_1 : i32, i32, i32
  }
  func.func @transform_3(%arg0: i32) -> (i32, i32) {
    %c0_i32 = arith.constant 0 : i32
    %c0_i32_0 = arith.constant 0 : i32
    %c0_i32_1 = arith.constant 0 : i32
    return %c0_i32, %c0_i32_0 : i32, i32
  }
  func.func @transform_4(%arg0: i32) -> (i32, i32) {
    %c0_i32 = arith.constant 0 : i32
    %c0_i32_0 = arith.constant 0 : i32
    return %arg0, %c0_i32 : i32, i32
  }
}

</mosaic_0001>

<bundles_post_ra>
// kernel: tpu_custom_call.1
= control target key start
LH: loop header
LB: loop body
LE: loop exit
PB: predicated region body
PF: predicated region fallthrough
CT: control target
= control target key end

     0   :  { %9 = vsyncpa [#allocation3], 0  ;;  %s1463_s0 = inlined_call_operand.hbm [shape: f32[16,32], index: 0, kind: input, shape index: {}]   ;;  %s1464_s1 = inlined_call_operand.hbm [shape: f32[32,96], index: 1, kind: input, shape index: {}]   ;;  %s1465_s2 = inlined_call_operand.hbm [shape: f32[2,32,32], index: 2, kind: input, shape index: {}]   ;;  %s1466_s3 = inlined_call_operand.hbm [shape: f32[8,32], index: 3, kind: input, shape index: {}]   ;;  %s1467_s4 = inlined_call_operand.hbm [shape: f32[16,32], index: 4, kind: output, shape index: {}]  }
   0x1   :  { %10 = vsyncpa [#allocation6], 0 }
   0x2   :  { %11 = vsyncpa [#allocation9], 0 }
   0x3   :  { %12 = vsyncpa [#allocation4], 0  ;;  %s30_s17 = sshll.u32 %s1464_s1, 4  ;;  %s1246_s18 = smov [#allocation5]   ;;  %s31_s17 = int_to_ptr.hbm [resolvable:$true] %s30_s17 }
   0x4   :  { %s32_s19 = sshll.u32 %s1246_s18, 4  ;;  %s17_s22 = sshll.u32 %s1463_s0, 4  ;;  %s33_s19 = int_to_ptr.vmem [resolvable:$true] %s32_s19  ;;  %s18_s22 = int_to_ptr.hbm [resolvable:$true] %s17_s22 }
   0x5   :  { %s1247_s23 = smov 128   ;;  %s1248_s24 = smov 8  }
   0x6   :  { %38 = dma.hbm_to_vmem [thread:$0]  %s31_s17, 512, %s33_s19, [#allocation6], %s1247_s23, %s1247_s23, %s1248_s24  }
   0x7   :  { %s1249_s25 = smov [#allocation2]   ;;  %s43_s1 = sshll.u32 %s1465_s2, 4  ;;  %s44_s1 = int_to_ptr.hbm [resolvable:$true] %s43_s1 }
   0x8   :  { %s19_s26 = sshll.u32 %s1249_s25, 4  ;;  %s57_s30 = sshll.u32 %s1466_s3, 4  ;;  %s20_s26 = int_to_ptr.vmem [resolvable:$true] %s19_s26  ;;  %s58_s30 = int_to_ptr.hbm [resolvable:$true] %s57_s30 }
   0x9   :  { %25 = dma.hbm_to_vmem [thread:$0]  %s18_s22, 256, %s20_s26, [#allocation3], %s1247_s23, %s1247_s23, %s1248_s24  }
   0xa   :  { %s1250_s5 = smov [#allocation7]   ;;  %s1251_s7 = smov [#allocation8]  }
   0xb   :  { %s45_s6 = sshll.u32 %s1250_s5, 4  ;;  %s59_s2 = sshll.u32 %s1251_s7, 4  ;;  %s46_s6 = int_to_ptr.vmem [resolvable:$true] %s45_s6  ;;  %s60_s2 = int_to_ptr.vmem [resolvable:$true] %s59_s2 }
   0xc   :  { %51 = dma.hbm_to_vmem [thread:$0]  %s44_s1, 1024, %s46_s6, [#allocation6], %s1247_s23, %s1247_s23, %s1248_s24  }
   0xd   :  { %62 = dma.hbm_to_vmem [thread:$0]  %s58_s30, 128, %s60_s2, [#allocation9]  }
   0xe   :  { %1238 = dma.done.wait [#allocation3], 256  }
   0xf   :  { %1239 = vsyncadd [#allocation3], 4294967040 }
  0x10   :  { %1240 = dma.done.wait [#allocation6], 1536  }
  0x11   :  { %1241 = vsyncadd [#allocation6], 4294965760 }
  0x12   :  { %1242 = dma.done.wait [#allocation9], 128  }
  0x13   :  { %1243 = vsyncadd [#allocation9], 4294967168  ;;  %vm88_vm0 = vcmask 261120   ;;  %v1312_v0 = vld [vmem:[#allocation2] sm:$0xff]  ;;  %v1314_v1 = vld [vmem:[#allocation2 + $0x8] sm:$0xff]  ;;  %v1252_v4 = vmov 32.0  }
  0x14   :  { %v89_v2 = vsel %vm88_vm0, %v1312_v0, 0.0  ;;  %v92_v3 = vsel %vm88_vm0, %v1314_v1, 0.0  ;;  %1080 = vrcp.f32 %v1252_v4  ;;  %v149_v21 = vld [vmem:[#allocation5 + $0x18] sm:$0xff]  ;;  %v148_v22 = vld [vmem:[#allocation5 + $0x10] sm:$0xff]  ;;  %v147_v23 = vld [vmem:[#allocation5 + $0x8] sm:$0xff]  ;;  %s1253_s3 = smov 32  }
  0x15   :  { %90 = vadd.xlane.f32.xlu0 %v89_v2  ;;  %93 = vadd.xlane.f32.xlu1 %v92_v3  ;;  %v146_v24 = vld [vmem:[#allocation5] sm:$0xff]  ;;  %s1254_s8 = smov 72   ;;  %s1255_s9 = smov 88   ;;  %vm208_vm8 = vcmask 64512  }
  0x16   :  { %168 = vmatpush.msra.mxu0 %v149_v21  ;;  %v1075_v31 = vld [vmem:[#allocation8 + $0x3] ss:$0 sm:$0xff]  ;;  %v1073_v44 = vld [vmem:[#allocation8] ss:$0 sm:$0xff]  ;;  %v1074_v48 = vld [vmem:[#allocation8 + $0x1] ss:$0 sm:$0xff] }
  0x17   :  { %s1256_s10 = smov 96   ;;  %v1076_v57 = vld [vmem:[#allocation8 + $0x2] ss:$0 sm:$0xff]  ;;  %s1257_s11 = smov 104   ;;  %v1077_v61 = vld [vmem:[#allocation8 + $0x4] ss:$0 sm:$0xff] }
  0x18   :  { %169 = vmatpush.msra.mxu0 %v148_v22  ;;  %s1258_s12 = smov 120   ;;  %s1259_s13 = smov 64  }
  0x19   :  { %s1260_s14 = smov 112   ;;  %s1261_s15 = smov 80  }
  0x1a   :  { %v1081_v5 = vpop.eup %1080  ;;  %170 = vmatpush.msra.mxu0 %v147_v23  ;;  %s1262_s16 = smov 56   ;;  %s1263_s17 = smov 40  }
  0x1b   :  { %v96_v6 = vmul.f32 32.0, %v1081_v5  ;;  %vm100_vm1 = vweird.f32 %v1081_v5  ;;  %s1264_s18 = smov 48   ;;  %s1265_s19 = smov [#allocation10]  }
  0x1c   :  { %171 = vmatpush.msra.mxu0 %v146_v24  ;;  %s1000_s20 = sshll.u32 %s1265_s19, 4  ;;  %s1002_s25 = sshll.u32 %s1467_s4, 4  ;;  %s1001_s20 = int_to_ptr.vmem [resolvable:$true] %s1000_s20  ;;  %s1003_s25 = int_to_ptr.hbm [resolvable:$true] %s1002_s25 }
  0x1d   :  { %v97_v7 = vsub.f32 1.0, %v96_v6 }
  0x1f   :  { %v98_v8 = vmul.f32 %v1081_v5, %v97_v7 }
  0x21   :  { %v99_v9 = vadd.f32 %v1081_v5, %v98_v8 }
  0x23   :  { %v101_v10 = vsel %vm100_vm1, %v1081_v5, %v99_v9 }
  0x2e   :  { %184 = vrot.lane.b32.xlu1 %v1075_v31, %s1253_s3 }
  0x88   :  { %v91_v11 = vpop.xlane.xlu0 %90  ;;  %v94_v12 = vpop.xlane.xlu1 %93 }
  0x89   :  { %v102_v13 = vmul.f32 %v101_v10, %v91_v11  ;;  %v103_v14 = vmul.f32 %v101_v10, %v94_v12 }
  0x8b   :  { %v104_v15 = vsub.f32 %v1312_v0, %v102_v13  ;;  %v105_v16 = vsub.f32 %v1314_v1, %v103_v14 }
  0x8d   :  { %v106_v17 = vmul.f32 %v104_v15, %v104_v15  ;;  %v107_v18 = vmul.f32 %v105_v16, %v105_v16 }
  0x8f   :  { %v108_v19 = vsel %vm88_vm0, %v106_v17, 0.0  ;;  %v111_v20 = vsel %vm88_vm0, %v107_v18, 0.0 }
  0x90   :  { %109 = vadd.xlane.f32.xlu0 %v108_v19  ;;  %112 = vadd.xlane.f32.xlu2 %v111_v20 }
  0xa0   :  { %v185_v54 = vpop.permute.xlu1 %184 }
 0x103   :  { %v110_v25 = vpop.xlane.xlu0 %109  ;;  %v113_v26 = vpop.xlane.xlu2 %112 }
 0x104   :  { %v114_v27 = vmul.f32 %v110_v25, %v101_v10  ;;  %v115_v28 = vmul.f32 %v113_v26, %v101_v10 }
 0x106   :  { %v116_v29 = vadd.f32 1e-05, %v114_v27  ;;  %v117_v30 = vadd.f32 1e-05, %v115_v28 }
 0x108   :  { %1082 = vrsqrt.f32 %v116_v29  ;;  %vm134_vm2 = vweird.f32 %v117_v30  ;;  %vm124_vm5 = vweird.f32 %v116_v29 }
 0x109   :  { %1084 = vrsqrt.f32 %v117_v30 }
 0x10e   :  { %v1083_v32 = vpop.eup %1082 }
 0x10f   :  { %v1085_v33 = vpop.eup %1084  ;;  %v119_v34 = vmul.f32 %v1083_v32, %v116_v29  ;;  %vm125_vm4 = vweird.f32 %v1083_v32 }
 0x110   :  { %v129_v35 = vmul.f32 %v1085_v33, %v117_v30  ;;  %vm135_vm3 = vweird.f32 %v1085_v33  ;;  %vm126_vm7 = vmor %vm124_vm5, %vm125_vm4 }
 0x111   :  { %v120_v36 = vmul.f32 %v1083_v32, %v119_v34  ;;  %vm136_vm6 = vmor %vm134_vm2, %vm135_vm3 }
 0x112   :  { %v130_v37 = vmul.f32 %v1085_v33, %v129_v35 }
 0x113   :  { %v121_v38 = vmul.f32 0.5, %v120_v36 }
 0x114   :  { %v131_v39 = vmul.f32 0.5, %v130_v37 }
 0x115   :  { %v122_v40 = vsub.f32 1.5, %v121_v38 }
 0x116   :  { %v132_v41 = vsub.f32 1.5, %v131_v39 }
 0x117   :  { %v123_v42 = vmul.f32 %v1083_v32, %v122_v40 }
 0x118   :  { %v133_v43 = vmul.f32 %v1085_v33, %v132_v41 }
 0x119   :  { %v127_v45 = vsel %vm126_vm7, %v1083_v32, %v123_v42 }
 0x11a   :  { %v137_v46 = vsel %vm136_vm6, %v1085_v33, %v133_v43  ;;  %v138_v47 = vmul.f32 %v127_v45, %v104_v15 }
 0x11b   :  { %v139_v50 = vmul.f32 %v137_v46, %v105_v16 }
 0x11c   :  { %v141_v49 = vmul.f32 %v1073_v44, %v138_v47 }
 0x11d   :  { %v142_v52 = vmul.f32 %v1073_v44, %v139_v50 }
 0x11e   :  { %v144_v51 = vadd.f32 %v1074_v48, %v141_v49 }
 0x11f   :  { %v145_v53 = vadd.f32 %v1074_v48, %v142_v52 }
 0x120   :  { %1017 = vmatmul.msk.f32.vlgmr.msra.gmra.mxu0 %vm88_vm0, %v144_v51 }
 0x128   :  { %1018 = vmatmul.msk.f32.gmra.mxu0 %vm88_vm0, %v145_v53 }
 0x19d   :  { %v173_v55 = vpop.f32.mrf.mxu0 }
 0x19e   :  { %v187_v56 = vadd.f32 %v185_v54, %v173_v55  ;;  %v180_v58 = vadd.f32 %v1076_v57, %v173_v55 }
 0x1a0   :  { %483 = vrot.lane.b32.xlu1 %v187_v56, %s1254_s8  ;;  %277 = vrot.lane.b32.xlu0 %v187_v56, %s1255_s9 }
 0x1a1   :  { %206 = vrot.lane.b32.xlu2 %v187_v56, %s1256_s10 }
 0x1a5   :  { %v1330_v59 = vpop.f32.mrf.mxu0 }
 0x1a6   :  { %v1333_v60 = vadd.f32 %v185_v54, %v1330_v59  ;;  %v1345_v6 = vadd.f32 %v1076_v57, %v1330_v59 }
 0x1a8   :  { %481 = vrot.lane.b32.xlu0 %v180_v58, %s1257_s11 }
 0x1a9   :  { %275 = vrot.lane.b32.xlu2 %v180_v58, %s1258_s12 }
 0x1b1   :  { %603 = vrot.lane.b32.xlu2 %v1333_v60, %s1256_s10 }
 0x1b9   :  { %191 = vrot.lane.b32.xlu2 %v1077_v61, %s1259_s13 }
 0x1fb   :  { %v207_v62 = vpop.permute.xlu2 %206 }
 0x1fc   :  { %1019 = vmatpush.xpose.msk.msra.mxu1 %vm208_vm8, %v207_v62 }
 0x1ff   :  { %1020 = vmatmul.msk.f32.vlgmr.msra.gmra.mxu1 %vm208_vm8, %v180_v58 }
 0x203   :  { %v276_v63 = vpop.permute.xlu2 %275 }
 0x20b   :  { %v604_v4 = vpop.permute.xlu2 %603 }
 0x212   :  { %v484_v2 = vpop.permute.xlu1 %483  ;;  %v278_v3 = vpop.permute.xlu0 %277 }
 0x213   :  { %1022 = vmatpush.xpose.msk.msra.mxu3 %vm208_vm8, %v278_v3  ;;  %1031 = vmatpush.xpose.msk.msrb.mxu0 %vm208_vm8, %v484_v2  ;;  %v192_v11 = vpop.permute.xlu2 %191  ;;  %v197_v2 = vld [vmem:[#allocation7 + $0x8] sm:$0xff] }
 0x214   :  { %v1351_v12 = vadd.f32 %v192_v11, %v173_v55  ;;  %v1365_v35 = vadd.f32 %v192_v11, %v1330_v59  ;;  %361 = vmatpush.msrb.mxu1 %v197_v2 }
 0x216   :  { %1023 = vmatmul.msk.f32.vlgmr.msra.gmra.mxu3 %vm208_vm8, %v276_v63 }
 0x217   :  { %1036 = vmatpush.xpose.msk.msra.mxu0 %vm208_vm8, %v604_v4 }
 0x21a   :  { %v482_v5 = vpop.permute.xlu0 %481 }
 0x21b   :  { %1032 = vmatmul.msk.f32.vlgmr.msrb.gmra.mxu0 %vm208_vm8, %v482_v5 }
 0x21c   :  { %757 = vmatpush.msrb.mxu0 %v197_v2 }
 0x223   :  { %1037 = vmatmul.msk.f32.vlgmr.msra.gmra.mxu0 %vm208_vm8, %v1345_v6 }
 0x27c   :  { %v231_v7 = vpop.f32.mrf.mxu1 }
 0x27d   :  { %v234_v8 = vsel %vm208_vm8, %v231_v7, -inf }
 0x27e   :  { %235 = vmax.xlane.f32.xlu1 %v234_v8 }
 0x298   :  { %v506_v13 = vpop.f32.mrf.mxu0 }
 0x299   :  { %v300_v9 = vpop.f32.mrf.mxu3  ;;  %v509_v14 = vsel %vm208_vm8, %v506_v13, -inf }
 0x29a   :  { %v303_v10 = vsel %vm208_vm8, %v300_v9, -inf }
 0x29b   :  { %304 = vmax.xlane.f32.xlu0 %v303_v10 }
 0x2a0   :  { %v627_v30 = vpop.f32.mrf.mxu0 }
 0x2a1   :  { %v630_v31 = vsel %vm208_vm8, %v627_v30, -inf }
 0x2af   :  { %249 = vrot.lane.b32.xlu0 %v1351_v12, %s1259_s13 }
 0x2b7   :  { %389 = vrot.lane.b32.xlu0 %v180_v58, %s1260_s14  ;;  %v196_v58 = vld [vmem:[#allocation7] sm:$0xff] }
 0x2b8   :  { %384 = vmatpush.msrb.mxu3 %v196_v58 }
 0x2e1   :  { %510 = vmax.xlane.f32.xlu0 %v509_v14 }
 0x2f1   :  { %v236_v15 = vpop.xlane.xlu1 %235 }
 0x2f2   :  { %v237_v16 = vsub.f32 %v231_v7, %v236_v15 }
 0x2f4   :  { %v238_v17 = vmul.f32 1.442695, %v237_v16 }
 0x2f6   :  { %1086 = vpow2.f32 %v238_v17 }
 0x2fc   :  { %v1087_v18 = vpop.eup %1086 }
 0x2fd   :  { %v240_v19 = vsel %vm208_vm8, %v1087_v18, 0.0 }
 0x2fe   :  { %241 = vadd.xlane.f32.xlu2 %v240_v19 }
 0x30e   :  { %v305_v20 = vpop.xlane.xlu0 %304 }
 0x30f   :  { %v306_v21 = vsub.f32 %v300_v9, %v305_v20 }
 0x311   :  { %v307_v22 = vmul.f32 1.442695, %v306_v21 }
 0x313   :  { %1088 = vpow2.f32 %v307_v22 }
 0x316   :  { %391 = vrot.lane.b32.xlu2 %v187_v56, %s1261_s15 }
 0x319   :  { %v1089_v23 = vpop.eup %1088 }
 0x31a   :  { %v309_v24 = vsel %vm208_vm8, %v1089_v23, 0.0 }
 0x31b   :  { %310 = vadd.xlane.f32.xlu1 %v309_v24 }
 0x321   :  { %v250_v25 = vpop.permute.xlu0 %249 }
 0x322   :  { %270 = vmatpush.msra.mxu2 %v250_v25 }
 0x329   :  { %v390_v26 = vpop.permute.xlu0 %389 }
 0x334   :  { %317 = vrot.lane.b32.xlu1 %v1351_v12, %s1262_s16 }
 0x354   :  { %v511_v27 = vpop.xlane.xlu0 %510 }
 0x355   :  { %v512_v28 = vsub.f32 %v506_v13, %v511_v27 }
 0x357   :  { %v513_v29 = vmul.f32 1.442695, %v512_v28 }
 0x359   :  { %1090 = vpow2.f32 %v513_v29 }
 0x35e   :  { %631 = vmax.xlane.f32.xlu1 %v630_v31 }
 0x35f   :  { %v1091_v32 = vpop.eup %1090 }
 0x360   :  { %v515_v33 = vsel %vm208_vm8, %v1091_v32, 0.0 }
 0x361   :  { %516 = vadd.xlane.f32.xlu2 %v515_v33 }
 0x371   :  { %v242_v34 = vpop.xlane.xlu2 %241 }
 0x372   :  { %1092 = vrcp.f32 %v242_v34 }
 0x377   :  { %523 = vrot.lane.b32.xlu1 %v1351_v12, %s1263_s17 }
 0x378   :  { %v1093_v36 = vpop.eup %1092 }
 0x379   :  { %v244_v37 = vmul.f32 %v1093_v36, %v242_v34  ;;  %645 = vrot.lane.b32.xlu2 %v1365_v35, %s1259_s13  ;;  %v392_v48 = vpop.permute.xlu2 %391 }
 0x37b   :  { %v245_v38 = vsub.f32 2.0, %v244_v37  ;;  %v198_v37 = vld [vmem:[#allocation7 + $0x10] sm:$0xff] }
 0x37c   :  { %475 = vmatpush.msra.mxu3 %v198_v37  ;;  %871 = vmatpush.msra.mxu0 %v198_v37 }
 0x37d   :  { %v246_v39 = vmul.f32 %v1093_v36, %v245_v38 }
 0x37f   :  { %673 = vrot.lane.b32.xlu1 %v1333_v60, %s1255_s9  ;;  %v247_v40 = vmul.f32 %v1087_v18, %v246_v39 }
 0x381   :  { %1021 = vmatmul.msk.f32.vlgmr.msra.gmra.mxu2 %vm208_vm8, %v247_v40  ;;  %671 = vrot.lane.b32.xlu2 %v1345_v6, %s1258_s12 }
 0x387   :  { %879 = vrot.lane.b32.xlu1 %v1333_v60, %s1254_s8 }
 0x389   :  { %877 = vrot.lane.b32.xlu2 %v1345_v6, %s1257_s11 }
 0x38e   :  { %v311_v41 = vpop.xlane.xlu1 %310 }
 0x38f   :  { %787 = vrot.lane.b32.xlu1 %v1333_v60, %s1261_s15  ;;  %1094 = vrcp.f32 %v311_v41 }
 0x395   :  { %v1095_v42 = vpop.eup %1094 }
 0x396   :  { %v313_v43 = vmul.f32 %v1095_v42, %v311_v41 }
 0x398   :  { %v314_v44 = vsub.f32 2.0, %v313_v43 }
 0x39a   :  { %v315_v45 = vmul.f32 %v1095_v42, %v314_v44 }
 0x39c   :  { %v316_v46 = vmul.f32 %v1089_v23, %v315_v45 }
 0x3a6   :  { %v318_v47 = vpop.permute.xlu1 %317 }
 0x3a7   :  { %338 = vmatpush.msrb.mxu2 %v318_v47 }
 0x3a8   :  { %1024 = vmatmul.msk.f32.vlgmr.msrb.gmra.mxu2 %vm208_vm8, %v316_v46 }
 0x3a9   :  { %1027 = vmatpush.xpose.msk.msra.mxu2 %vm208_vm8, %v392_v48 }
 0x3b0   :  { %1028 = vmatmul.msk.f32.vlgmr.msra.gmra.mxu2 %vm208_vm8, %v390_v26 }
 0x3d1   :  { %v632_v49 = vpop.xlane.xlu1 %631 }
 0x3d2   :  { %v633_v50 = vsub.f32 %v627_v30, %v632_v49 }
 0x3d4   :  { %v634_v51 = vmul.f32 1.442695, %v633_v50  ;;  %v517_v52 = vpop.xlane.xlu2 %516  ;;  %v1417_v50 = vld [vmem:[#allocation7 + $0x38] sm:$0xff] }
 0x3d5   :  { %1096 = vrcp.f32 %v517_v52 }
 0x3d6   :  { %1098 = vpow2.f32 %v634_v51  ;;  %v1420_v51 = vld [vmem:[#allocation7 + $0x30] sm:$0xff] }
 0x3db   :  { %v1097_v53 = vpop.eup %1096 }
 0x3dc   :  { %v1099_v54 = vpop.eup %1098  ;;  %v519_v55 = vmul.f32 %v1097_v53, %v517_v52  ;;  %v646_v62 = vpop.permute.xlu2 %645  ;;  %v1423_v52 = vld [vmem:[#allocation7 + $0x28] sm:$0xff] }
 0x3dd   :  { %v636_v56 = vsel %vm208_vm8, %v1099_v54, 0.0 }
 0x3de   :  { %637 = vadd.xlane.f32.xlu0 %v636_v56  ;;  %v520_v57 = vsub.f32 2.0, %v519_v55 }
 0x3e0   :  { %v521_v59 = vmul.f32 %v1097_v53, %v520_v57  ;;  %v1426_v53 = vld [vmem:[#allocation7 + $0x20] sm:$0xff] }
 0x3e2   :  { %v522_v60 = vmul.f32 %v1091_v32, %v521_v59 }
 0x3e4   :  { %v672_v22 = vpop.permute.xlu2 %671 }
 0x3e9   :  { %v524_v61 = vpop.permute.xlu1 %523 }
 0x3ea   :  { %544 = vmatpush.msrb.mxu2 %v524_v61  ;;  %v1429_v61 = vld [vmem:[#allocation8 + $0x5] ss:$0 sm:$0xff] }
 0x3eb   :  { %1033 = vmatmul.msk.f32.vlgmr.msrb.gmra.mxu2 %vm208_vm8, %v522_v60 }
 0x3ec   :  { %666 = vmatpush.msra.mxu2 %v646_v62  ;;  %v878_v24 = vpop.permute.xlu2 %877 }
 0x3ee   :  { %780 = vmatpush.msrb.mxu2 %v196_v58 }
 0x3f1   :  { %v674_v8 = vpop.permute.xlu1 %673 }
 0x3f9   :  { %v880_v15 = vpop.permute.xlu1 %879 }
 0x404   :  { %v272_v63 = vpop.f32.mrf.mxu2 }
 0x405   :  { %1026 = vmatmul.msk.f32.vlgmr.msrb.gmra.mxu3 %vm208_vm8, %v272_v63 }
 0x406   :  { %592 = vmatpush.msrb.mxu3 %v1417_v50 }
 0x408   :  { %593 = vmatpush.msrb.mxu3 %v1420_v51 }
 0x40a   :  { %594 = vmatpush.msrb.mxu3 %v1423_v52 }
 0x40c   :  { %595 = vmatpush.msrb.mxu3 %v1426_v53 }
 0x42b   :  { %v340_v3 = vpop.f32.mrf.mxu2 }
 0x42c   :  { %1025 = vmatmul.msk.f32.vlgmr.msrb.gmra.mxu1 %vm208_vm8, %v340_v3 }
 0x433   :  { %v414_v4 = vpop.f32.mrf.mxu2 }
 0x434   :  { %v417_v5 = vsel %vm208_vm8, %v414_v4, -inf }
 0x435   :  { %418 = vmax.xlane.f32.xlu0 %v417_v5 }
 0x451   :  { %v638_v7 = vpop.xlane.xlu0 %637 }
 0x452   :  { %1100 = vrcp.f32 %v638_v7 }
 0x458   :  { %v1101_v9 = vpop.eup %1100 }
 0x459   :  { %v640_v10 = vmul.f32 %v1101_v9, %v638_v7 }
 0x45b   :  { %v641_v11 = vsub.f32 2.0, %v640_v10 }
 0x45d   :  { %v642_v13 = vmul.f32 %v1101_v9, %v641_v11 }
 0x45f   :  { %v643_v14 = vmul.f32 %v1099_v54, %v642_v13 }
 0x461   :  { %1038 = vmatmul.msk.f32.vlgmr.msra.gmra.mxu2 %vm208_vm8, %v643_v14 }
 0x462   :  { %1048 = vmatpush.xpose.msk.msra.mxu2 %vm208_vm8, %v880_v15 }
 0x46e   :  { %v546_v21 = vpop.f32.mrf.mxu2 }
 0x488   :  { %v386_v54 = vpop.f32.mrf.mxu3 }
 0x4a8   :  { %v419_v16 = vpop.xlane.xlu0 %418 }
 0x4a9   :  { %v420_v17 = vsub.f32 %v414_v4, %v419_v16  ;;  %v363_v38 = vpop.f32.mrf.mxu1 }
 0x4aa   :  { %v387_v55 = vadd.f32 %v386_v54, %v363_v38 }
 0x4ab   :  { %v421_v18 = vmul.f32 1.442695, %v420_v17 }
 0x4ad   :  { %1102 = vpow2.f32 %v421_v18 }
 0x4b3   :  { %v1103_v19 = vpop.eup %1102 }
 0x4b4   :  { %v423_v20 = vsel %vm208_vm8, %v1103_v19, 0.0 }
 0x4b5   :  { %424 = vadd.xlane.f32.xlu0 %v423_v20 }
 0x4c9   :  { %431 = vrot.lane.b32.xlu0 %v1351_v12, %s1264_s18  ;;  %v1399_v12 = vld [vmem:[#allocation7 + $0x18] sm:$0xff] }
 0x4d1   :  { %785 = vrot.lane.b32.xlu0 %v1345_v6, %s1260_s14  ;;  %v788_v6 = vpop.permute.xlu1 %787 }
 0x4e4   :  { %v668_v23 = vpop.f32.mrf.mxu2 }
 0x4e5   :  { %1043 = vmatmul.msk.f32.vlgmr.msrb.gmra.mxu2 %vm208_vm8, %v668_v23  ;;  %v1079_v23 = vld [vmem:[#allocation8 + $0x6] ss:$0 sm:$0xff] }
 0x4ed   :  { %1049 = vmatmul.msk.f32.vlgmr.msra.gmra.mxu2 %vm208_vm8, %v878_v24 }
 0x528   :  { %v425_v25 = vpop.xlane.xlu0 %424 }
 0x529   :  { %1104 = vrcp.f32 %v425_v25 }
 0x52f   :  { %v1105_v26 = vpop.eup %1104 }
 0x530   :  { %v427_v27 = vmul.f32 %v1105_v26, %v425_v25 }
 0x532   :  { %v428_v28 = vsub.f32 2.0, %v427_v27 }
 0x534   :  { %v429_v29 = vmul.f32 %v1105_v26, %v428_v28 }
 0x536   :  { %v430_v30 = vmul.f32 %v1103_v19, %v429_v29 }
 0x53b   :  { %v432_v31 = vpop.permute.xlu0 %431 }
 0x53c   :  { %452 = vmatpush.msra.mxu1 %v432_v31 }
 0x53d   :  { %1029 = vmatmul.msk.f32.vlgmr.msra.gmra.mxu1 %vm208_vm8, %v430_v30 }
 0x53e   :  { %567 = vmatpush.msrb.mxu1 %v1399_v12 }
 0x540   :  { %1039 = vmatpush.xpose.msk.msra.mxu1 %vm208_vm8, %v674_v8 }
 0x543   :  { %v786_v32 = vpop.permute.xlu0 %785 }
 0x545   :  { %1034 = vmatmul.msk.f32.vlgmr.msrb.gmra.mxu1 %vm208_vm8, %v546_v21 }
 0x546   :  { %1044 = vmatpush.xpose.msk.msrb.mxu1 %vm208_vm8, %v788_v6 }
 0x54d   :  { %1040 = vmatmul.msk.f32.vlgmr.msra.gmra.mxu1 %vm208_vm8, %v672_v22 }
 0x555   :  { %1045 = vmatmul.msk.f32.vlgmr.msrb.gmra.mxu1 %vm208_vm8, %v786_v32 }
 0x568   :  { %v1408_v33 = vpop.f32.mrf.mxu2 }
 0x570   :  { %v902_v34 = vpop.f32.mrf.mxu2 }
 0x571   :  { %v905_v36 = vsel %vm208_vm8, %v902_v34, -inf }
 0x572   :  { %906 = vmax.xlane.f32.xlu0 %v905_v36 }
 0x5ba   :  { %v454_v39 = vpop.f32.mrf.mxu1 }
 0x5bb   :  { %1030 = vmatmul.msk.f32.vlgmr.msra.gmra.mxu3 %vm208_vm8, %v454_v39 }
 0x5c2   :  { %v569_v40 = vpop.f32.mrf.mxu1 }
 0x5ca   :  { %v696_v41 = vpop.f32.mrf.mxu1 }
 0x5cb   :  { %v699_v42 = vsel %vm208_vm8, %v696_v41, -inf }
 0x5cc   :  { %700 = vmax.xlane.f32.xlu2 %v699_v42 }
 0x5d2   :  { %v810_v43 = vpop.f32.mrf.mxu1 }
 0x5d3   :  { %v813_v44 = vsel %vm208_vm8, %v810_v43, -inf }
 0x5d4   :  { %814 = vmax.xlane.f32.xlu1 %v813_v44 }
 0x5e5   :  { %v907_v45 = vpop.xlane.xlu0 %906 }
 0x5e6   :  { %v908_v46 = vsub.f32 %v902_v34, %v907_v45 }
 0x5e8   :  { %v909_v47 = vmul.f32 1.442695, %v908_v46 }
 0x5ea   :  { %1106 = vpow2.f32 %v909_v47 }
 0x5f0   :  { %v1107_v48 = vpop.eup %1106 }
 0x5f1   :  { %v911_v49 = vsel %vm208_vm8, %v1107_v48, 0.0 }
 0x5f2   :  { %912 = vadd.xlane.f32.xlu0 %v911_v49 }
 0x606   :  { %919 = vrot.lane.b32.xlu0 %v1365_v35, %s1263_s17 }
 0x63e   :  { %v477_v56 = vpop.f32.mrf.mxu3 }
 0x63f   :  { %v480_v57 = vadd.f32 %v477_v56, %v387_v55  ;;  %v701_v58 = vpop.xlane.xlu2 %700 }
 0x640   :  { %v702_v59 = vsub.f32 %v696_v41, %v701_v58 }
 0x641   :  { %v572_v60 = vadd.f32 %v569_v40, %v480_v57 }
 0x642   :  { %v703_v62 = vmul.f32 1.442695, %v702_v59 }
 0x643   :  { %v573_v63 = vadd.f32 %v572_v60, %v1312_v0 }
 0x644   :  { %1108 = vpow2.f32 %v703_v62 }
 0x645   :  { %v575_v2 = vadd.f32 %v1429_v61, %v573_v63 }
 0x647   :  { %1035 = vmatmul.msk.f32.vlgmr.msrb.gmra.mxu3 %vm88_vm0, %v575_v2  ;;  %v815_v3 = vpop.xlane.xlu1 %814 }
 0x648   :  { %v816_v4 = vsub.f32 %v810_v43, %v815_v3 }
 0x64a   :  { %v1109_v5 = vpop.eup %1108  ;;  %v817_v7 = vmul.f32 1.442695, %v816_v4 }
 0x64b   :  { %v705_v8 = vsel %vm208_vm8, %v1109_v5, 0.0 }
 0x64c   :  { %1110 = vpow2.f32 %v817_v7  ;;  %706 = vadd.xlane.f32.xlu2 %v705_v8 }
 0x652   :  { %v1111_v9 = vpop.eup %1110 }
 0x653   :  { %v819_v10 = vsel %vm208_vm8, %v1111_v9, 0.0 }
 0x654   :  { %820 = vadd.xlane.f32.xlu1 %v819_v10 }
 0x664   :  { %713 = vrot.lane.b32.xlu2 %v1365_v35, %s1262_s16 }
 0x665   :  { %v913_v0 = vpop.xlane.xlu0 %912 }
 0x666   :  { %1112 = vrcp.f32 %v913_v0 }
 0x66c   :  { %v1113_v11 = vpop.eup %1112 }
 0x66d   :  { %v915_v13 = vmul.f32 %v1113_v11, %v913_v0  ;;  %827 = vrot.lane.b32.xlu1 %v1365_v35, %s1264_s18 }
 0x66f   :  { %v916_v14 = vsub.f32 2.0, %v915_v13 }
 0x671   :  { %v917_v15 = vmul.f32 %v1113_v11, %v916_v14 }
 0x673   :  { %v918_v16 = vmul.f32 %v1107_v48, %v917_v15 }
 0x678   :  { %v920_v17 = vpop.permute.xlu0 %919 }
 0x679   :  { %940 = vmatpush.msra.mxu1 %v920_v17 }
 0x67a   :  { %1050 = vmatmul.msk.f32.vlgmr.msra.gmra.mxu1 %vm208_vm8, %v918_v16 }
 0x6bf   :  { %v707_v18 = vpop.xlane.xlu2 %706 }
 0x6c0   :  { %1114 = vrcp.f32 %v707_v18 }
 0x6c6   :  { %v1115_v19 = vpop.eup %1114 }
 0x6c7   :  { %v709_v20 = vmul.f32 %v1115_v19, %v707_v18  ;;  %v714_v21 = vpop.permute.xlu2 %713  ;;  %v821_v22 = vpop.xlane.xlu1 %820 }
 0x6c8   :  { %734 = vmatpush.msra.mxu3 %v714_v21  ;;  %1116 = vrcp.f32 %v821_v22 }
 0x6c9   :  { %v710_v24 = vsub.f32 2.0, %v709_v20 }
 0x6ca   :  { %v597_v25 = vpop.f32.mrf.mxu3 }
 0x6cb   :  { %v711_v26 = vmul.f32 %v1115_v19, %v710_v24  ;;  %v598_v35 = vadd.f32 %v1079_v23, %v597_v25 }
 0x6cd   :  { %v712_v27 = vmul.f32 %v1109_v5, %v711_v26  ;;  %v600_v28 = vadd.f32 %v598_v35, %v575_v2 }
 0x6ce   :  { %v1117_v29 = vpop.eup %1116 }
 0x6cf   :  { %601 = vst.msk [vmem:[#allocation10] sm:$0xff] %vm88_vm0, %v600_v28  ;;  %1041 = vmatmul.msk.f32.vlgmr.msra.gmra.mxu3 %vm208_vm8, %v712_v27  ;;  %v823_v30 = vmul.f32 %v1117_v29, %v821_v22 }
 0x6d1   :  { %v824_v31 = vsub.f32 2.0, %v823_v30 }
 0x6d3   :  { %v825_v6 = vmul.f32 %v1117_v29, %v824_v31 }
 0x6d5   :  { %v826_v32 = vmul.f32 %v1111_v9, %v825_v6 }
 0x6df   :  { %v828_v34 = vpop.permute.xlu1 %827 }
 0x6e0   :  { %848 = vmatpush.msrb.mxu3 %v828_v34 }
 0x6e1   :  { %1046 = vmatmul.msk.f32.vlgmr.msrb.gmra.mxu3 %vm208_vm8, %v826_v32 }
 0x6e2   :  { %963 = vmatpush.msra.mxu3 %v1399_v12 }
 0x6f7   :  { %v942_v36 = vpop.f32.mrf.mxu1 }
 0x6f8   :  { %1051 = vmatmul.msk.f32.vlgmr.msra.gmra.mxu3 %vm208_vm8, %v942_v36 }
 0x752   :  { %v736_v37 = vpop.f32.mrf.mxu3 }
 0x753   :  { %1042 = vmatmul.msk.f32.vlgmr.msrb.gmra.mxu0 %vm208_vm8, %v736_v37 }
 0x754   :  { %986 = vmatpush.msrb.mxu0 %v1417_v50 }
 0x756   :  { %987 = vmatpush.msrb.mxu0 %v1420_v51 }
 0x758   :  { %988 = vmatpush.msrb.mxu0 %v1423_v52 }
 0x75a   :  { %989 = vmatpush.msrb.mxu0 %v1426_v53 }
 0x764   :  { %v850_v38 = vpop.f32.mrf.mxu3 }
 0x765   :  { %1047 = vmatmul.msk.f32.vlgmr.msra.gmra.mxu0 %vm208_vm8, %v850_v38 }
 0x77b   :  { %v965_v42 = vpop.f32.mrf.mxu3 }
 0x7d0   :  { %v759_v39 = vpop.f32.mrf.mxu0 }
 0x7d1   :  { %v783_v12 = vadd.f32 %v1408_v33, %v759_v39 }
 0x7e2   :  { %v873_v40 = vpop.f32.mrf.mxu0 }
 0x7e3   :  { %v876_v41 = vadd.f32 %v873_v40, %v783_v12 }
 0x7e5   :  { %v968_v43 = vadd.f32 %v965_v42, %v876_v41 }
 0x7e7   :  { %v969_v44 = vadd.f32 %v968_v43, %v1314_v1 }
 0x7e9   :  { %v970_v45 = vadd.f32 %v1429_v61, %v969_v44 }
 0x7eb   :  { %1052 = vmatmul.msk.f32.vlgmr.msrb.gmra.mxu0 %vm88_vm0, %v970_v45 }
 0x868   :  { %v991_v46 = vpop.f32.mrf.mxu0 }
 0x869   :  { %v992_v47 = vadd.f32 %v1079_v23, %v991_v46 }
 0x86b   :  { %v994_v48 = vadd.f32 %v992_v47, %v970_v45 }
 0x86d   :  { %995 = vst.msk [vmem:[#allocation10 + $0x8] sm:$0xff] %vm88_vm0, %v994_v48 }
 0x86e   :  { %1008 = dma.vmem_to_hbm [thread:$0]  %s1001_s20, 256, %s1003_s25, [#allocation4], %s1247_s23, %s1247_s23, %s1248_s24  }
 0x86f   :  { %1244 = dma.done.wait [#allocation4], 256  }
 0x870   :  { %1245 = vsyncadd [#allocation4], 4294967040 }
 0x871   :  { %1013 = vsyncpa [#allocation3], 1 }
 0x872   :  { %1014 = vsyncpa [#allocation6], 1 }
 0x873   :  { %1015 = vsyncpa [#allocation9], 1 }
 0x874   :  { %1016 = vsyncpa [#allocation4], 1 }

</bundles_post_ra>
